<compile_context>
chip_gen: v5e
topology: v5e:2x2
jax: 0.10.0
libtpu: 0.0.40
codegen_flags: <defaults>
</compile_context>

<pallas_src>
import numpy as np
import jax
import jax.numpy as jnp
from jax import lax
from jax.experimental import pallas as pl
from jax.experimental.pallas import tpu as pltpu

_LANE = 128               # TPU vreg lane width
_LANE_TILE = 2048         # lanes per grid step (feedback: 2048-8192 sweet spot)
_PALLAS_MIN_BATCH = 8192  # below this a fused XLA path beats the launch overhead


def _round_up(n, m):
    return ((n + m - 1) // m) * m


def _cdiv(a, b):
    return (a + b - 1) // b


def _pick_tile(B):
    # Prefer >=2 grid steps (v7x has 2 TensorCores; "parallel" lets Mosaic shard
    # them) while keeping tiles lane-dense multiples of 128 and large enough to
    # amortise per-step overhead.  VMEM cost is KB-scale even at the max tile,
    # so v7x's smaller (64 MiB) VMEM imposes no constraint here.
    if B >= 2 * _LANE_TILE:
        return _LANE_TILE
    return max(_LANE, _round_up(_cdiv(B, 2), _LANE))


def _quat_norm_kernel(qx_ref, qy_ref, qz_ref, qw_ref, o_ref):
    # Each input ref: (1, T) f32 with batch on the lane axis (lane-dense loads).
    qx = qx_ref[...]
    qy = qy_ref[...]
    qz = qz_ref[...]
    qw = qw_ref[...]
    # Sum of squares = pure VPU elementwise adds (no cross-lane XLU reduce);
    # rsqrt lands on the otherwise-idle EUP slot.  NOTE: a genuinely zero-norm
    # quaternion yields inf/NaN -- same (unguarded) failure class as the
    # PyTorch divide.  Ragged-last-block padding lanes may also produce inf,
    # but their stores are masked off by Pallas, so this is harmless.
    inv = lax.rsqrt(qx * qx + qy * qy + qz * qz + qw * qw)          # (1, T)
    o_ref[...] = jnp.concatenate([qx, qy, qz, qw], axis=0) * inv    # (4, T) lane-dense store


def quat_normalize(qx, qy, qz, qw, *, use_pallas=None):
    """Row-wise L2 normalisation of a batch of quaternions -> (B, 4)."""
    B = qx.shape[0]
    if use_pallas is None:
        use_pallas = B >= _PALLAS_MIN_BATCH
    qx = qx.astype(jnp.float32)
    qy = qy.astype(jnp.float32)
    qz = qz.astype(jnp.float32)
    qw = qw.astype(jnp.float32)

    if not use_pallas:
        # Small-batch fast path: one tiny fused XLA elementwise op; a
        # pallas_call here would be 100-1000x slower from launch overhead.
        q = jnp.stack([qx, qy, qz, qw], axis=1)                      # (B, 4)
        return q * lax.rsqrt(jnp.sum(q * q, axis=1, keepdims=True))

    tile = _pick_tile(B)
    grid = (_cdiv(B, tile),)
    # (B,) -> (1, B) is metadata only: no stack / pad / extra HBM pass.
    ins = [a.reshape(1, B) for a in (qx, qy, qz, qw)]
    in_spec = pl.BlockSpec((1, tile), lambda i: (0, i))

    qn = pl.pallas_call(
        _quat_norm_kernel,
        out_shape=jax.ShapeDtypeStruct((4, B), jnp.float32),
        grid=grid,
        in_specs=[in_spec, in_spec, in_spec, in_spec],
        out_specs=pl.BlockSpec((4, tile), lambda i: (0, i)),
        compiler_params=pltpu.CompilerParams(dimension_semantics=("parallel",)),
    )(*ins)
    # Module contract is (B, 4); this is one small XLA relayout pass.
    # TODO(synk): consumers that accept batch-on-lane (4, B) layout should use
    # `qn` directly and skip this transpose entirely.
    return qn.T


def pose_forward(qx, qy, qz, qw, x, y, z, *, use_pallas=None):
    """Quaternion normalisation (Pallas at large B); translation is XLA glue."""
    quat = quat_normalize(qx, qy, qz, qw, use_pallas=use_pallas)
    # Pure pass-through stack, no compute: keep it as a single fused XLA pass,
    # no kernel round-trip.
    trans = jnp.stack([x, y, z], axis=1).astype(jnp.float32)        # (B, 3)
    return quat, trans


class Object3DJax:
    """JAX/Pallas port of diffdope.Object3D (pose parameters + mesh dict)."""

    def __init__(self, position, rotation, batchsize=32, scale=1, mesh=None):
        # TODO(synk): the pyrr-based opencv_2_opengl init-time coordinate
        # conversion is omitted; parameters are initialised directly.
        assert len(position) == 3 and len(rotation) == 4
        position = np.asarray(position, dtype=np.float32) * scale
        rotation = np.asarray(rotation, dtype=np.float32)
        self._position, self._rotation = position, rotation
        ones = jnp.ones((batchsize,), dtype=jnp.float32)
        self.qx = ones * float(rotation[0])
        self.qy = ones * float(rotation[1])
        self.qz = ones * float(rotation[2])
        self.qw = ones * float(rotation[3])
        self.x = ones * float(position[0])
        self.y = ones * float(position[1])
        self.z = ones * float(position[2])
        self.mesh = mesh  # dict of batched mesh buffers (Mesh.forward is pass-through)

    def forward(self):
        quat, trans = pose_forward(
            self.qx, self.qy, self.qz, self.qw, self.x, self.y, self.z
        )
        out = dict(self.mesh) if self.mesh is not None else {}
        out["quat"] = quat
        out["trans"] = trans
        return out


def make_synthetic_mesh(key, batchsize, n_vtx=16, n_tri=8):
    """Deterministic stand-in for Mesh (already batched, as Mesh.set_batchsize does)."""
    k1, k2, k3 = jax.random.split(key, 3)
    pos = jax.random.normal(k1, (n_vtx, 3), dtype=jnp.float32)
    vtx_color = jax.random.uniform(k2, (n_vtx, 3), dtype=jnp.float32)
    vtx_normals = jax.random.normal(k3, (n_vtx, 3), dtype=jnp.float32)
    pos_idx = jnp.arange(n_tri * 3, dtype=jnp.int32).reshape(n_tri, 3) % n_vtx
    batch = lambda a: jnp.broadcast_to(a[None], (batchsize,) + a.shape)
    return {
        "pos": batch(pos),
        "pos_idx": batch(pos_idx),
        "vtx_color": batch(vtx_color),
        "vtx_normals": batch(vtx_normals),
    }


if __name__ == "__main__":
    key = jax.random.PRNGKey(0)

    # --- 1) module-level check at the small default-ish batch (fast XLA path) ---
    B = 8
    mesh = make_synthetic_mesh(key, B)
    position = [0.1, -0.2, 0.5]
    rotation = [0.2, -0.1, 0.3, 0.9]  # (x, y, z, w) quaternion, unnormalised on purpose
    obj = Object3DJax(position, rotation, batchsize=B, scale=1, mesh=mesh)
    out = obj.forward()
    quat = jax.block_until_ready(out["quat"])
    trans = jax.block_until_ready(out["trans"])

    q_np = np.stack([np.asarray(obj.qx), np.asarray(obj.qy),
                     np.asarray(obj.qz), np.asarray(obj.qw)], axis=1)
    q_ref = q_np / np.linalg.norm(q_np, axis=1, keepdims=True)
    t_ref = np.stack([np.asarray(obj.x), np.asarray(obj.y), np.asarray(obj.z)], axis=1)
    assert quat.shape == (B, 4) and trans.shape == (B, 3)
    np.testing.assert_allclose(np.asarray(quat), q_ref, rtol=1e-5, atol=1e-6)
    np.testing.assert_allclose(np.asarray(trans), t_ref, rtol=1e-6, atol=1e-7)

    # --- 2) exercise the Pallas kernel path once (forced, modest batch) ---------
    Bk = 256
    ks = jax.random.split(jax.random.PRNGKey(0), 4)
    qk = [jax.random.normal(k, (Bk,), dtype=jnp.float32) for k in ks]
    quat_k = jax.block_until_ready(
        quat_normalize(qk[0], qk[1], qk[2], qk[3], use_pallas=True))
    qk_np = np.stack([np.asarray(a) for a in qk], axis=1)
    qk_ref = qk_np / np.linalg.norm(qk_np, axis=1, keepdims=True)
    assert quat_k.shape == (Bk, 4)
    np.testing.assert_allclose(np.asarray(quat_k), qk_ref, rtol=1e-5, atol=1e-6)

    print("KERNEL_OK")
</pallas_src>

<mosaic_0001>
module attributes {stable_mosaic.version = 11 : i64} {
  func.func @_quat_norm_kernel(%arg0: i32, %arg1: memref<1x128xf32, #tpu.memory_space<vmem>>, %arg2: memref<1x128xf32, #tpu.memory_space<vmem>>, %arg3: memref<1x128xf32, #tpu.memory_space<vmem>>, %arg4: memref<1x128xf32, #tpu.memory_space<vmem>>, %arg5: memref<4x128xf32, #tpu.memory_space<vmem>>) attributes {dimension_semantics = [#tpu.dimension_semantics<parallel>], iteration_bounds = array<i64: 2>, scalar_prefetch = 0 : i64, scratch_operands = 0 : i64, tpu.core_type = #tpu.core_type<tc>, window_params = [{transform_indices = @transform_0, window_bounds = array<i64: 1, 128>}, {transform_indices = @transform_1, window_bounds = array<i64: 1, 128>}, {transform_indices = @transform_2, window_bounds = array<i64: 1, 128>}, {transform_indices = @transform_3, window_bounds = array<i64: 1, 128>}, {transform_indices = @transform_4, window_bounds = array<i64: 4, 128>}]} {
    %c0 = arith.constant 0 : index
    %c0_0 = arith.constant 0 : index
    %0 = vector.load %arg1[%c0, %c0_0] : memref<1x128xf32, #tpu.memory_space<vmem>>, vector<1x128xf32>
    %c0_1 = arith.constant 0 : index
    %c0_2 = arith.constant 0 : index
    %1 = vector.load %arg2[%c0_1, %c0_2] : memref<1x128xf32, #tpu.memory_space<vmem>>, vector<1x128xf32>
    %c0_3 = arith.constant 0 : index
    %c0_4 = arith.constant 0 : index
    %2 = vector.load %arg3[%c0_3, %c0_4] : memref<1x128xf32, #tpu.memory_space<vmem>>, vector<1x128xf32>
    %c0_5 = arith.constant 0 : index
    %c0_6 = arith.constant 0 : index
    %3 = vector.load %arg4[%c0_5, %c0_6] : memref<1x128xf32, #tpu.memory_space<vmem>>, vector<1x128xf32>
    %4 = arith.mulf %0, %0 : vector<1x128xf32>
    %5 = arith.mulf %1, %1 : vector<1x128xf32>
    %6 = arith.addf %4, %5 : vector<1x128xf32>
    %7 = arith.mulf %2, %2 : vector<1x128xf32>
    %8 = arith.addf %6, %7 : vector<1x128xf32>
    %9 = arith.mulf %3, %3 : vector<1x128xf32>
    %10 = arith.addf %8, %9 : vector<1x128xf32>
    %11 = math.rsqrt %10 : vector<1x128xf32>
    %12 = tpu.concatenate %0, %1, %2, %3 in 0 : vector<1x128xf32>, vector<1x128xf32>, vector<1x128xf32>, vector<1x128xf32> -> vector<4x128xf32>
    %13 = vector.broadcast %11 : vector<1x128xf32> to vector<4x128xf32>
    %14 = arith.mulf %12, %13 : vector<4x128xf32>
    %c0_7 = arith.constant 0 : index
    %c0_8 = arith.constant 0 : index
    %15 = vector.load %arg5[%c0_7, %c0_8] : memref<4x128xf32, #tpu.memory_space<vmem>>, vector<4x128xf32>
    tpu.vector_store %arg5[%c0_7, %c0_8], %14 {strides = array<i32>} : memref<4x128xf32, #tpu.memory_space<vmem>>, vector<4x128xf32>,
    return
  }
  func.func @transform_0(%arg0: i32) -> (i32, i32) {
    %c0_i32 = arith.constant 0 : i32
    %c0_i32_0 = arith.constant 0 : i32
    return %c0_i32, %arg0 : i32, i32
  }
  func.func @transform_1(%arg0: i32) -> (i32, i32) {
    %c0_i32 = arith.constant 0 : i32
    %c0_i32_0 = arith.constant 0 : i32
    return %c0_i32, %arg0 : i32, i32
  }
  func.func @transform_2(%arg0: i32) -> (i32, i32) {
    %c0_i32 = arith.constant 0 : i32
    %c0_i32_0 = arith.constant 0 : i32
    return %c0_i32, %arg0 : i32, i32
  }
  func.func @transform_3(%arg0: i32) -> (i32, i32) {
    %c0_i32 = arith.constant 0 : i32
    %c0_i32_0 = arith.constant 0 : i32
    return %c0_i32, %arg0 : i32, i32
  }
  func.func @transform_4(%arg0: i32) -> (i32, i32) {
    %c0_i32 = arith.constant 0 : i32
    %c0_i32_0 = arith.constant 0 : i32
    return %c0_i32, %arg0 : i32, i32
  }
}

</mosaic_0001>

<bundles_post_ra>
// kernel: tpu_custom_call.1
= control target key start
LH: loop header
LB: loop body
LE: loop exit
PB: predicated region body
PF: predicated region fallthrough
CT: control target
= control target key end

     0   :  { %s898_s0 = inlined_call_operand.hbm [shape: f32[1,256], index: 0, kind: input, shape index: {}]   ;;  %s899_s1 = inlined_call_operand.hbm [shape: f32[1,256], index: 1, kind: input, shape index: {}]   ;;  %s900_s2 = inlined_call_operand.hbm [shape: f32[1,256], index: 2, kind: input, shape index: {}]   ;;  %s901_s3 = inlined_call_operand.vmem [shape: f32[1,256], index: 3, kind: input, shape index: {}]   ;;  %s902_s4 = inlined_call_operand.hbm [shape: f32[4,256], index: 4, kind: output, shape index: {}]  }
   0x1   :  { %903 = sst [smem:[#allocation13_spill]] %s899_s1 }
   0x2   :  { %9 = vsyncpa [#allocation3], 0 }
   0x3   :  { %11 = vsyncpa [#allocation3 + $0x1], 0 }
   0x4   :  { %12 = vsyncpa [#allocation6], 0 }
   0x5   :  { %14 = vsyncpa [#allocation6 + $0x1], 0 }
   0x6   :  { %15 = vsyncpa [#allocation4], 0 }
   0x7   :  { %17 = vsyncpa [#allocation4 + $0x1], 0  ;;  %s716_s15 = smov 0   ;;  %s718_s16 = smov 0  }
   0x8   :  { %s720_s17 = smov 0   ;;  %s722_s18 = smov 0  }
   0x9 LB: > { %s737_s19 = sadd.s32 4294967295, %s689_s18   ;;  %s459_s20 = sadd.s32 4294967294, %s689_s18   ;;  %s689_s18 = sphi %s722_s18, %s915_s18   ;;  %s685_s17 = sphi %s720_s17, %s914_s17   ;;  %s681_s16 = sphi %s718_s16, %s913_s16   ;;  %s677_s15 = sphi %s716_s15, %s912_s15  }
   0xa   : > { %s741_s21 = sadd.s32 1, %s689_s18   ;;  %s30_s22 = sadd.s32 1, %s685_s17 }
   0xb   : > { %s27_s23 = ssub.s32 %s689_s18, %s741_s21  ;;  %p37_p0 = scmp.ne.s32.totalorder %s685_s17, %s681_s16 }
   0xc   : > { %p28_p1 = scmp.eq.s32.totalorder %s27_s23, 0  ;;  %p38_p2 = scmp.eq.s32.totalorder %s689_s18, 0 }
   0xd   : > { %p43_p3 = scmp.ne.s32.totalorder %s681_s16, %s677_s15  ;;  %p44_p4 = scmp.eq.s32.totalorder %s737_s19, 0 }
   0xe   : > { %s753_s24 = scalar_select %p28_p1, %s685_s17, %s30_s22  }
   0xf   : > { %p39_p5 = por %p38_p2, %p37_p0  ;;  %p755_p6 = por %p44_p4, %p43_p3 }
  0x10   : > { %904 = sst [smem:[#allocation12_spill]] %s753_s24  ;;  %p145_p7 = scmp.eq.s32.totalorder %s737_s19, 1 }
  0x11   : > { %p151_p8 = scmp.eq.s32.totalorder %s459_s20, 1  ;;  %p461_p9 = scmp.ge.s32.totalorder %s689_s18, 2 }
  0x12   : > { %p490_p10 = scmp.lt.s32.totalorder %s689_s18, 2  ;;  %p762_p11 = por %p145_p7, %p37_p0 }
  0x13   : > { %p766_p12 = por %p151_p8, %p43_p3  ;;  %s771_s28 = sand.u32 1, %s685_s17  }
  0x14   : > { %p773_p13 = pnand %p490_p10, %p39_p5  ;;  %s188_s30 = sand.u32 1, %s689_s18  }
  0x15   : > { %s909_s1 = sld [smem:[#allocation13_spill]]  ;;  %s191_s8 = scalar_lea.vmem [#allocation5], %s771_s28 }
  0x16   : > { %s198_s9 = sshll.u32 %s191_s8, 4  ;;  %p462_p0 = scmp.ge.s32.totalorder %s689_s18, 1  ;;  %s199_s9 = int_to_ptr.vmem [resolvable:$true] %s198_s9 }
  0x17   : > { %s784_s11 = scalar_lea.sflag [#allocation6], %s188_s30  ;;  %p533_p2 = pneg %p773_p13 }
  0x1b   : > { %s194_s7 = scalar_lea.hbm %s909_s1, %s689_s18  ;;  %s536_s22 = scalar_lea.hbm %s909_s1, 2 }
  0x1c   : > { %s196_s10 = sshll.u32 %s194_s7, 4  ;;  %s197_s10 = int_to_ptr.hbm [resolvable:$true] %s196_s10 }
  0x1d   : > { %s529_s12 = sshra.s32 %s197_s10, 4  ;;  %s530_s12 = int_to_ptr.hbm [resolvable:$true] %s529_s12 }
  0x1e   : > { %s531_s13 = scalar_lea.hbm %s530_s12, 1  ;;  %p537_p5 = scmp.lt.s32.totalorder %s530_s12, %s909_s1 }
  0x1f   : > { %p532_p1 = scmp.ne.s32.totalorder %s530_s12, %s531_s13  ;;  %p538_p7 = scmp.lt.s32.totalorder %s536_s22, %s531_s13 }
  0x21   : > { %p534_p3 = pnand %p533_p2, %p532_p1  ;;  %p539_p8 = por %p538_p7, %p537_p5 }
  0x23   : > { %p535_p4 = pneg %p534_p3 }
  0x25   : > { %p540_p10 = pnand %p539_p8, %p535_p4 }
  0x27   : > { %543 = shalt.err (!%p540_p10)
}
  0x28   : > { %482 = dma.hbm_to_vmem [thread:$0]  (!%p773_p13), %s197_s10, 16, %s199_s9, %s784_s11  }
  0x29   : > { %p226_p1 = scmp.lt.s32.totalorder %s689_s18, 3  ;;  %s177_s7 = scalar_lea.hbm %s898_s0, %s689_s18 }
  0x2a   : > { %s179_s12 = sshll.u32 %s177_s7, 4  ;;  %s174_s13 = scalar_lea.vmem [#allocation2], %s771_s28  ;;  %s180_s12 = int_to_ptr.hbm [resolvable:$true] %s179_s12 }
  0x2b   : > { %p807_p3 = pnand %p462_p0, %p226_p1  ;;  %s181_s14 = sshll.u32 %s174_s13, 4  ;;  %s182_s14 = int_to_ptr.vmem [resolvable:$true] %s181_s14 }
  0x2c   : > { %s172_s20 = scalar_lea.sflag [#allocation3], %s771_s28  ;;  %s559_s22 = sshra.s32 %s180_s12, 4  ;;  %s560_s22 = int_to_ptr.hbm [resolvable:$true] %s559_s22 }
  0x2d   : > { %s561_s23 = scalar_lea.hbm %s560_s22, 1  ;;  %s566_s5 = scalar_lea.hbm %s898_s0, 2 }
  0x2e   : > { %p562_p4 = scmp.ne.s32.totalorder %s560_s22, %s561_s23  ;;  %p567_p0 = scmp.lt.s32.totalorder %s560_s22, %s898_s0 }
  0x2f   : > { %p568_p8 = scmp.lt.s32.totalorder %s566_s5, %s561_s23 }
  0x30   : > { %p564_p5 = pnand %p562_p4, %p533_p2 }
  0x31   : > { %p569_p10 = por %p568_p8, %p567_p0 }
  0x32   : > { %p565_p7 = pneg %p564_p5 }
  0x34   : > { %p570_p1 = pnand %p569_p10, %p565_p7 }
  0x36   : > { %573 = shalt.err (!%p570_p1)
}
  0x37   : > { %479 = dma.hbm_to_vmem [thread:$0]  (!%p773_p13), %s180_s12, 16, %s182_s14, %s172_s20  }
  0x38   : > { %s211_s1 = scalar_lea.hbm %s900_s2, %s689_s18  ;;  %s208_s9 = scalar_lea.vmem [#allocation7], %s771_s28 }
  0x39   : > { %s215_s10 = sshll.u32 %s208_s9, 4  ;;  %s213_s24 = sshll.u32 %s211_s1, 4  ;;  %s216_s10 = int_to_ptr.vmem [resolvable:$true] %s215_s10  ;;  %s214_s24 = int_to_ptr.hbm [resolvable:$true] %s213_s24 }
  0x3a   : > { %s589_s22 = sshra.s32 %s214_s24, 4  ;;  %s596_s12 = scalar_lea.hbm %s900_s2, 2  ;;  %s590_s22 = int_to_ptr.hbm [resolvable:$true] %s589_s22 }
  0x3b   : > { %s591_s23 = scalar_lea.hbm %s590_s22, 1  ;;  %p597_p0 = scmp.lt.s32.totalorder %s590_s22, %s900_s2 }
  0x3c   : > { %p592_p4 = scmp.ne.s32.totalorder %s590_s22, %s591_s23  ;;  %p598_p8 = scmp.lt.s32.totalorder %s596_s12, %s591_s23 }
  0x3e   : > { %p594_p5 = pnand %p592_p4, %p533_p2  ;;  %p599_p10 = por %p598_p8, %p597_p0 }
  0x40   : > { %p595_p7 = pneg %p594_p5 }
  0x42   : > { %p600_p1 = pnand %p599_p10, %p595_p7 }
  0x44   : > { %603 = shalt.err (!%p600_p1)
}
  0x45   : > { %485 = dma.hbm_to_vmem [thread:$0]  (!%p773_p13), %s214_s24, 16, %s216_s10, %s784_s11  }
  0x46   : > { %230 = sbr.rel (%p807_p3) target bundleno = 114 (0x72), region = 36  ;;  %s844_s1 = sand.u32 (!%p807_p3), 1, %s681_s16  }
  0x47   : > { %s233_s28 = scalar_lea.sflag (!%p807_p3), [#allocation3], %s844_s1  ;;  %s235_s6 = scalar_lea.vmem (!%p807_p3), [#allocation2], %s844_s1 }
  0x4b   : > { %664 = dma.done.wait (%p755_p6), %s233_s28, 16  }
  0x4c   : > { %666 = vsyncadd (%p755_p6), %s233_s28, 4294967280  ;;  %s241_s24 = sand.u32 1, %s737_s19   ;;  %s244_s11 = scalar_lea.vmem [#allocation5], %s844_s1 }
  0x4d   : > { %s242_s29 = scalar_lea.sflag [#allocation6], %s241_s24 }
  0x4e   : > { %668 = dma.done.wait (%p755_p6), %s242_s29, 32  }
  0x4f   : > { %670 = vsyncadd (%p755_p6), %s242_s29, 4294967264  ;;  %p289_p13 = scmp.lt.s32.totalorder %s737_s19, 1  ;;  %v292_v0 = vld [vmem:[%s235_s6] sm:$0x1]  ;;  %s253_s10 = scalar_lea.vmem [#allocation7], %s844_s1  ;;  %vm322_vm0 = vcmask 1040384  }
  0x50   : > { %v293_v1 = vld [vmem:[%s244_s11] sm:$0x1]  ;;  %v296_v4 = vmul.f32 %v292_v0, %v292_v0  ;;  %vm324_vm1 = vcmask 1041408   ;;  %s463_s25 = sshll.u32 %s844_s1, 2  ;;  %s465_s22 = sshll.u32 %s737_s19, 2  ;;  %vm326_vm5 = vcmask 1042432  }
  0x51   : > { %s290_s8 = scalar_select %p289_p13, %s737_s19, 1  ;;  %v294_v2 = vld [vmem:[%s253_s10] sm:$0x1]  ;;  %v297_v5 = vmul.f32 %v293_v1, %v293_v1 }
  0x52   : > { %v299_v6 = vmul.f32 %v294_v2, %v294_v2  ;;  %v524_v13 = vld [vmem:[%s244_s11] ss:$0 sm:$0xff]  ;;  %s344_s30 = scalar_lea.hbm %s902_s4, %s465_s22  ;;  %s288_s12 = scalar_lea.vmem [#allocation8], %s463_s25 }
  0x53   : > { %s291_s9 = scalar_lea.vmem %s901_s3, %s290_s8  ;;  %v298_v7 = vadd.f32 %v297_v5, %v296_v4  ;;  %v525_v15 = vld [vmem:[%s253_s10] ss:$0 sm:$0xff]  ;;  %v323_v17 = vsel %vm322_vm0, %v292_v0, %v524_v13  ;;  %s346_s14 = sshll.u32 %s288_s12, 4  ;;  %s347_s14 = int_to_ptr.vmem [resolvable:$true] %s346_s14 }
  0x54   : > { %v295_v3 = vld [vmem:[%s291_s9] sm:$0x1]  ;;  %v325_v20 = vsel %vm324_vm1, %v323_v17, %v525_v15  ;;  %s348_s20 = sshll.u32 %s344_s30, 4  ;;  %s334_s19 = scalar_lea.sflag [#allocation4], %s844_s1  ;;  %s349_s20 = int_to_ptr.hbm [resolvable:$true] %s348_s20 }
  0x55   : > { %v301_v8 = vmul.f32 %v295_v3, %v295_v3  ;;  %v300_v9 = vadd.f32 %v299_v6, %v298_v7  ;;  %v526_v19 = vld [vmem:[%s291_s9] ss:$0 sm:$0xff]  ;;  %s633_s28 = sshra.s32 %s349_s20, 4  ;;  %s639_s11 = scalar_lea.hbm %s902_s4, 8  ;;  %s634_s28 = int_to_ptr.hbm [resolvable:$true] %s633_s28 }
  0x56   : > { %v327_v23 = vsel %vm326_vm5, %v325_v20, %v526_v19  ;;  %s635_s6 = scalar_lea.hbm %s634_s28, 4  ;;  %p640_p4 = scmp.lt.s32.totalorder %s634_s28, %s902_s4 }
  0x57   : > { %v302_v10 = vadd.f32 %v301_v8, %v300_v9  ;;  %p636_p6 = scmp.ne.s32.totalorder %s634_s28, %s635_s6  ;;  %p641_p5 = scmp.lt.s32.totalorder %s639_s11, %s635_s6 }
  0x59   : > { %527 = vrsqrt.f32 %v302_v10  ;;  %vm309_vm2 = vweird.f32 %v302_v10  ;;  %p637_p2 = pnand %p636_p6, %p762_p11  ;;  %p642_p7 = por %p641_p5, %p640_p4 }
  0x5b   : > { %p638_p3 = pneg %p637_p2 }
  0x5d   : > { %p643_p0 = pnand %p642_p7, %p638_p3 }
  0x5f   : > { %v528_v11 = vpop.eup %527 }
  0x60   : > { %v304_v12 = vmul.f32 %v528_v11, %v302_v10  ;;  %vm310_vm3 = vweird.f32 %v528_v11 }
  0x61   : > { %vm311_vm4 = vmor %vm309_vm2, %vm310_vm3 }
  0x62   : > { %v305_v14 = vmul.f32 %v528_v11, %v304_v12 }
  0x64   : > { %v306_v16 = vmul.f32 0.5, %v305_v14 }
  0x66   : > { %v307_v18 = vsub.f32 1.5, %v306_v16 }
  0x68   : > { %v308_v21 = vmul.f32 %v528_v11, %v307_v18 }
  0x6a   : > { %v312_v22 = vsel %vm311_vm4, %v528_v11, %v308_v21 }
  0x6b   : > { %v329_v24 = vperm.slane %v312_v22, 0 }
  0x6d   : > { %v331_v25 = vmul.f32 %v329_v24, %v327_v23 }
  0x6f   : > { %332 = vst [vmem:[%s288_s12] sm:$0xf] %v331_v25 }
  0x70   : > { %646 = shalt.err (!%p643_p0)
}
  0x71   : > { %474 = dma.vmem_to_hbm [thread:$0]  (%p762_p11), %s347_s14, 64, %s349_s20, %s334_s19  }
  0x72 PF: > { %s360_s1 = sand.u32 1, %s677_s15   ;;  %p487_p8 = pnand %p461_p9, %p766_p12 }
  0x73   : > { %s361_s13 = scalar_lea.sflag [#allocation4], %s360_s1 }
  0x74   : > { %p488_p10 = pneg %p487_p8 }
  0x76   : > { %672 = dma.done.wait (%p488_p10), %s361_s13, 64  }
  0x77   : > { %674 = vsyncadd (%p488_p10), %s361_s13, 4294967232  ;;  %s911_s9 = sld [smem:[#allocation12_spill]]  ;;  %p20_p1 = scmp.ge.s32.totalorder %s741_s21, 4  }
  0x78   : > { %s912_s15 = smov %s681_s16  ;;  %s913_s16 = smov %s685_s17 }
  0x79   : > { %s915_s18 = smov %s741_s21  ;;  %22 = sbr.rel (!%p20_p1) target bundleno = 9 (0x9), region = 108 }
  0x7d   : > { %s914_s17 = smov %s911_s9 }
  0x7e   :  { %367 = vsyncpa [#allocation3], 1 }
  0x7f   :  { %369 = vsyncpa [#allocation3 + $0x1], 1 }
  0x80   :  { %370 = vsyncpa [#allocation6], 1 }
  0x81   :  { %372 = vsyncpa [#allocation6 + $0x1], 1 }
  0x82   :  { %373 = vsyncpa [#allocation4], 1 }
  0x83   :  { %375 = vsyncpa [#allocation4 + $0x1], 1 }

</bundles_post_ra>
